<compile_context>
chip_gen: v7x
topology: tpu7x:2x2x1
jax: 0.10.0
libtpu: 0.0.40
codegen_flags: <defaults>
</compile_context>

<pallas_src>
import functools

import jax
import jax.numpy as jnp
from jax.experimental import pallas as pl
from jax.experimental.pallas import tpu as pltpu


def _clump_kernel(x_ref, o_ref, *, min_v, max_v):
    x = x_ref[...]
    lo = jnp.asarray(min_v, x.dtype)
    hi = jnp.asarray(max_v, x.dtype)
    o_ref[...] = jnp.clip(x, lo, hi)


# Candidate lane-dense widths (multiples of 128), widest first.
_WIDTHS = (4096, 2048, 1024, 512, 256, 128)
# ~2 MiB per block => long unmasked vst/DMA bursts, per-grid-step overhead amortized.
_TARGET_BLOCK_BYTES = 2 * 1024 * 1024


def clump(x, min_v=-50, max_v=50, *, donate=False):
    """Elementwise clamp implemented as a Pallas TPU kernel.

    Accepts an array of any shape; the wrapper's flatten/reshape is metadata-only
    for the common case (total size a multiple of 128) -- all the work happens in
    the kernel.

    donate=True adds input_output_aliases={0: 0} so the clamp runs in place; only
    turn it on when the caller actually donates `x` (e.g. jit donate_argnums),
    otherwise XLA inserts a defensive copy that costs an extra HBM round trip.
    """
    orig_shape = x.shape
    dtype = x.dtype
    n = x.size
    if n == 0:
        return x

    # Unsigned dtypes cannot represent the default min_v=-50; clamp the bound.
    if jnp.issubdtype(dtype, jnp.unsignedinteger):
        min_v = max(min_v, 0)

    # Pick the widest lane-dense last dim that divides n exactly (no padding).
    width = next((c for c in _WIDTHS if n % c == 0), None)
    padded = width is None
    if padded:
        # Rare fallback: total size not a multiple of 128 -> pad the flat tail.
        width = 128
        n_pad = pl.cdiv(n, width) * width
        x_flat = jnp.pad(jnp.ravel(x), (0, n_pad - n))
    else:
        n_pad = n
        x_flat = jnp.ravel(x)

    rows = n_pad // width
    x2d = x_flat.reshape(rows, width)

    # Block sizing: ~2 MiB, sublane dim a multiple of the packing factor
    # (8 for 32-bit, 16 for bf16, 32 for int8).
    itemsize = jnp.dtype(dtype).itemsize
    sub = max(8, 32 // max(itemsize, 1))
    block_rows = _TARGET_BLOCK_BYTES // (width * itemsize)
    block_rows = max(sub, (block_rows // sub) * sub)
    if block_rows >= rows:
        block_rows = rows  # block == full dim is always a legal shape
        if rows >= 2 * sub:
            # Split into >=2 grid steps so both v7x TensorCores get work.
            block_rows = ((rows // 2) // sub) * sub

    num_blocks = pl.cdiv(rows, block_rows)

    kernel = functools.partial(_clump_kernel, min_v=min_v, max_v=max_v)

    out2d = pl.pallas_call(
        kernel,
        out_shape=jax.ShapeDtypeStruct((rows, width), dtype),
        grid=(num_blocks,),
        in_specs=[pl.BlockSpec((block_rows, width), lambda i: (i, 0))],
        out_specs=pl.BlockSpec((block_rows, width), lambda i: (i, 0)),
        input_output_aliases=({0: 0} if donate else {}),
        compiler_params=pltpu.CompilerParams(
            dimension_semantics=("parallel",)),
    )(x2d)

    if padded:
        return out2d.reshape(-1)[:n].reshape(orig_shape)
    return out2d.reshape(orig_shape)


if __name__ == "__main__":
    key = jax.random.PRNGKey(0)
    # Small example input consistent with the module's generic tensor forward.
    x = jax.random.normal(key, (2, 4, 16, 16), dtype=jnp.float32) * 100.0

    y = jax.block_until_ready(clump(x, min_v=-50, max_v=50))
    y_ref = jnp.clip(x, -50, 50)
    assert y.shape == x.shape and y.dtype == x.dtype
    assert bool(jnp.allclose(y, y_ref)), "mismatch vs reference clamp"

    # Extra small shapes: ragged total size (pad fallback) and multi-block grid
    # with a ragged last block.
    for shape in [(3, 37), (515, 384)]:
        key, subkey = jax.random.split(key)
        xt = jax.random.normal(subkey, shape, dtype=jnp.float32) * 100.0
        yt = jax.block_until_ready(clump(xt))
        assert bool(jnp.allclose(yt, jnp.clip(xt, -50, 50))), f"mismatch at {shape}"

    print("KERNEL_OK")
</pallas_src>

<mosaic_0001>
module attributes {stable_mosaic.version = 11 : i64} {
  func.func @_clump_kernel(%arg0: i32, %arg1: memref<1x2048xf32, #tpu.memory_space<vmem>>, %arg2: memref<1x2048xf32, #tpu.memory_space<vmem>>) attributes {dimension_semantics = [#tpu.dimension_semantics<parallel>], iteration_bounds = array<i64: 1>, scalar_prefetch = 0 : i64, scratch_operands = 0 : i64, tpu.core_type = #tpu.core_type<tc>, window_params = [{transform_indices = @transform_0, window_bounds = array<i64: 1, 2048>}, {transform_indices = @transform_1, window_bounds = array<i64: 1, 2048>}]} {
    %c0 = arith.constant 0 : index
    %c0_0 = arith.constant 0 : index
    %0 = vector.load %arg1[%c0, %c0_0] : memref<1x2048xf32, #tpu.memory_space<vmem>>, vector<1x2048xf32>
    %cst = arith.constant -5.000000e+01 : f32
    %cst_1 = arith.constant 5.000000e+01 : f32
    %1 = vector.broadcast %cst : f32 to vector<1x2048xf32>
    %2 = arith.maximumf %1, %0 : vector<1x2048xf32>
    %3 = vector.broadcast %cst_1 : f32 to vector<1x2048xf32>
    %4 = arith.minimumf %3, %2 : vector<1x2048xf32>
    %c0_2 = arith.constant 0 : index
    %c0_3 = arith.constant 0 : index
    %5 = vector.load %arg2[%c0_2, %c0_3] : memref<1x2048xf32, #tpu.memory_space<vmem>>, vector<1x2048xf32>
    tpu.vector_store %arg2[%c0_2, %c0_3], %4 {strides = array<i32>} : memref<1x2048xf32, #tpu.memory_space<vmem>>, vector<1x2048xf32>,
    return
  }
  func.func @transform_0(%arg0: i32) -> (i32, i32) {
    %c0_i32 = arith.constant 0 : i32
    %c0_i32_0 = arith.constant 0 : i32
    return %arg0, %c0_i32 : i32, i32
  }
  func.func @transform_1(%arg0: i32) -> (i32, i32) {
    %c0_i32 = arith.constant 0 : i32
    %c0_i32_0 = arith.constant 0 : i32
    return %arg0, %c0_i32 : i32, i32
  }
}

</mosaic_0001>

<bundles_post_ra>
// kernel: tpu_custom_call.1
= control target key start
LH: loop header
LB: loop body
LE: loop exit
PB: predicated region body
PF: predicated region fallthrough
CT: control target
= control target key end

     0   :  { %6 = vsyncpa [#allocation3], 0  ;;  %s132_s0 = inlined_call_operand.hbm [shape: f32[1,2048], index: 0, kind: input, shape index: {}]   ;;  %s133_s1 = inlined_call_operand.hbm [shape: f32[1,2048], index: 1, kind: output, shape index: {}]  }
   0x1   :  { %7 = vsyncpa [#allocation4], 0  ;;  %s96_s6 = smov [#allocation2]   ;;  %s48_s10 = scalar_lea.hbm %s132_s0, 256 }
   0x2   :  { %s14_s7 = sshll.u32 %s96_s6, 4  ;;  %p49_p0 = scmp.ne.s32.totalorder %s132_s0, %s48_s10  ;;  %s15_s7 = int_to_ptr.vmem [resolvable:$true] %s14_s7 }
   0x3   :  { %p52_p1 = scmp.lt.u32.totalorder %s48_s10, %s132_s0 }
   0x5   :  { %p54_p2 = pnand %p52_p1, %p49_p0 }
   0x7   :  { %57 = shalt.err (!%p54_p2)
}
   0x8   :  { %s58_s15 = scalar_lea.vmem %s15_s7, 256  ;;  %p63_p4 = scmp.lt.s32.totalorder %s15_s7, %s15_s7 }
   0x9   :  { %p59_p3 = scmp.ne.s32.totalorder %s15_s7, %s58_s15  ;;  %p64_p5 = scmp.lt.s32.totalorder %s58_s15, %s58_s15 }
   0xb   :  { %p65_p6 = por %p64_p5, %p63_p4 }
   0xd   :  { %p66_p7 = pnand %p65_p6, %p59_p3 }
   0xf   :  { %69 = shalt.err (!%p66_p7)
}
  0x10   :  { %17 = dma.hbm_to_vmem [thread:$0]  %s132_s0, 256, %s15_s7, [#allocation3]  }
  0x11   :  { %92 = dma.done.wait [#allocation3], 256  }
  0x12   :  { %93 = vsyncadd [#allocation3], 4294967040  ;;  %s97_s18 = smov [#allocation5]   ;;  %v21_v0 = vld [vmem:[#allocation2] sm:$0xff]  ;;  %v22_v1 = vld [vmem:[#allocation2 + $0x8] sm:$0xff] }
  0x13   :  { %s35_s19 = sshll.u32 %s97_s18, 4  ;;  %v44_v2 = vclamps-f32 %v21_v0, 50.0  ;;  %v45_v3 = vclamps-f32 %v22_v1, 50.0  ;;  %s36_s19 = int_to_ptr.vmem [resolvable:$true] %s35_s19 }
  0x14   :  { %s70_s20 = scalar_lea.vmem %s36_s19, 256  ;;  %p75_p9 = scmp.lt.s32.totalorder %s36_s19, %s36_s19 }
  0x15   :  { %27 = vst [vmem:[#allocation5] sm:$0xff] %v44_v2  ;;  %28 = vst [vmem:[#allocation5 + $0x8] sm:$0xff] %v45_v3  ;;  %p71_p8 = scmp.ne.s32.totalorder %s36_s19, %s70_s20  ;;  %p76_p10 = scmp.lt.s32.totalorder %s70_s20, %s70_s20 }
  0x17   :  { %p77_p11 = por %p76_p10, %p75_p9 }
  0x19   :  { %p78_p12 = pnand %p77_p11, %p71_p8 }
  0x1b   :  { %81 = shalt.err (!%p78_p12)
}
  0x1c   :  { %s82_s22 = scalar_lea.hbm %s133_s1, 256 }
  0x1d   :  { %p83_p13 = scmp.ne.s32.totalorder %s133_s1, %s82_s22  ;;  %p86_p0 = scmp.lt.u32.totalorder %s82_s22, %s133_s1 }
  0x1f   :  { %p88_p1 = pnand %p86_p0, %p83_p13 }
  0x21   :  { %91 = shalt.err (!%p88_p1)
}
  0x22   :  { %38 = dma.vmem_to_hbm [thread:$0]  %s36_s19, 256, %s133_s1, [#allocation4]  }
  0x23   :  { %94 = dma.done.wait [#allocation4], 256  }
  0x24   :  { %95 = vsyncadd [#allocation4], 4294967040 }
  0x25   :  { %42 = vsyncpa [#allocation3], 1 }
  0x26   :  { %43 = vsyncpa [#allocation4], 1 }

</bundles_post_ra>
